<compile_context>
chip_gen: v7x
topology: tpu7x:2x2x1
jax: 0.10.0
libtpu: 0.0.40
codegen_flags: <defaults>
</compile_context>

<pallas_src>
import jax
import jax.numpy as jnp
from jax.experimental import pallas as pl
from jax.experimental.pallas import tpu as pltpu

F_PAD = 128  # lane-width padding for every feature dimension


def _round_up(x, m):
    return ((x + m - 1) // m) * m


def _pad2(m, rows, cols):
    return jnp.pad(m, ((0, rows - m.shape[0]), (0, cols - m.shape[1])))


# ----------------------------- Pallas kernels ------------------------------ #
def gcn_fused_kernel(a_ref, x_ref, w_ref, b_ref, wc_ref, bc_ref,
                     out_ref, h_out_ref, h_scratch):
    """All 3 GCN layers (+ classifier on the last) with A_hat resident in VMEM.

    Grid axis 0 = layer index (sequential).  A_hat / X / Wc / bc have constant
    block indices -> DMA'd once; W_l / b_l are selected per layer.
    """
    l = pl.program_id(0)

    @pl.when(l == 0)
    def _():
        h_scratch[...] = x_ref[...].astype(jnp.float32)

    # Projection H @ W_l (bf16 MXU inputs, f32 accumulation).
    hw = jnp.dot(h_scratch[...].astype(jnp.bfloat16), w_ref[0],
                 preferred_element_type=jnp.float32)
    # Aggregation A_hat @ (H W_l) + b_l, then tanh.
    h_new = jnp.tanh(
        jnp.dot(a_ref[...], hw.astype(jnp.bfloat16),
                preferred_element_type=jnp.float32) + b_ref[0])
    h_scratch[...] = h_new

    @pl.when(l == pl.num_programs(0) - 1)
    def _():
        h_out_ref[...] = h_new
        out_ref[...] = (jnp.dot(h_new.astype(jnp.bfloat16), wc_ref[...],
                                preferred_element_type=jnp.float32)
                        + bc_ref[...])


def proj_kernel(h_ref, w_ref, o_ref):
    """HW = H @ W (tiny projection), emitted in bf16 for the aggregation."""
    o_ref[...] = jnp.dot(h_ref[...], w_ref[...],
                         preferred_element_type=jnp.float32).astype(o_ref.dtype)


def gcn_stream_layer_kernel(a_ref, hw_ref, b_ref, o_ref):
    """One GCN layer, full-K row strip: o = tanh(A[i,:] @ HW + b)."""
    o_ref[...] = jnp.tanh(
        jnp.dot(a_ref[...], hw_ref[...], preferred_element_type=jnp.float32)
        + b_ref[...]).astype(o_ref.dtype)


def gcn_stream_final_kernel(a_ref, hw_ref, b_ref, wc_ref, bc_ref,
                            out_ref, h_out_ref):
    """Last GCN layer + Linear classifier, full-K row strip."""
    h = jnp.tanh(
        jnp.dot(a_ref[...], hw_ref[...], preferred_element_type=jnp.float32)
        + b_ref[...])
    h_out_ref[...] = h
    out_ref[...] = (jnp.dot(h.astype(jnp.bfloat16), wc_ref[...],
                            preferred_element_type=jnp.float32)
                    + bc_ref[...])


# -------------------------- pallas_call builders ---------------------------- #
_VMEM_LIMIT = 48 * 1024 * 1024  # safe on v7x (64 MiB physical) too


def _fused_call(a_pad, x_pad, w_stack, b_stack, wc, bc):
    n_pad = a_pad.shape[0]
    return pl.pallas_call(
        gcn_fused_kernel,
        out_shape=(jax.ShapeDtypeStruct((n_pad, F_PAD), jnp.float32),   # out
                   jax.ShapeDtypeStruct((n_pad, F_PAD), jnp.float32)),  # h
        grid_spec=pltpu.PrefetchScalarGridSpec(
            num_scalar_prefetch=0,
            grid=(3,),
            in_specs=[
                pl.BlockSpec((n_pad, n_pad), lambda l: (0, 0)),        # A_hat (resident)
                pl.BlockSpec((n_pad, F_PAD), lambda l: (0, 0)),        # X (bf16)
                pl.BlockSpec((1, F_PAD, F_PAD), lambda l: (l, 0, 0)),  # W_l (bf16)
                pl.BlockSpec((1, 1, F_PAD), lambda l: (l, 0, 0)),      # b_l (f32)
                pl.BlockSpec((F_PAD, F_PAD), lambda l: (0, 0)),        # Wc (bf16)
                pl.BlockSpec((1, F_PAD), lambda l: (0, 0)),            # bc (f32)
            ],
            out_specs=(pl.BlockSpec((n_pad, F_PAD), lambda l: (0, 0)),
                       pl.BlockSpec((n_pad, F_PAD), lambda l: (0, 0))),
            scratch_shapes=[pltpu.VMEM((n_pad, F_PAD), jnp.float32)],
        ),
        compiler_params=pltpu.CompilerParams(
            dimension_semantics=("arbitrary",),
            vmem_limit_bytes=_VMEM_LIMIT),
    )(a_pad, x_pad, w_stack, b_stack, wc, bc)


def _proj_call(h, w, tm):
    n_pad = h.shape[0]
    return pl.pallas_call(
        proj_kernel,
        out_shape=jax.ShapeDtypeStruct((n_pad, F_PAD), jnp.bfloat16),
        grid_spec=pltpu.PrefetchScalarGridSpec(
            num_scalar_prefetch=0,
            grid=(n_pad // tm,),
            in_specs=[pl.BlockSpec((tm, F_PAD), lambda i: (i, 0)),
                      pl.BlockSpec((F_PAD, F_PAD), lambda i: (0, 0))],
            out_specs=pl.BlockSpec((tm, F_PAD), lambda i: (i, 0)),
        ),
        compiler_params=pltpu.CompilerParams(
            dimension_semantics=("parallel",),
            vmem_limit_bytes=_VMEM_LIMIT),
    )(h, w)


def _stream_layer_call(a_pad, hw, b, tm):
    n_pad = a_pad.shape[0]
    return pl.pallas_call(
        gcn_stream_layer_kernel,
        out_shape=jax.ShapeDtypeStruct((n_pad, F_PAD), jnp.bfloat16),
        grid_spec=pltpu.PrefetchScalarGridSpec(
            num_scalar_prefetch=0,
            grid=(n_pad // tm,),
            in_specs=[pl.BlockSpec((tm, n_pad), lambda i: (i, 0)),     # A row strip
                      pl.BlockSpec((n_pad, F_PAD), lambda i: (0, 0)),  # HW (bf16)
                      pl.BlockSpec((1, F_PAD), lambda i: (0, 0))],     # b
            out_specs=pl.BlockSpec((tm, F_PAD), lambda i: (i, 0)),
        ),
        compiler_params=pltpu.CompilerParams(
            dimension_semantics=("parallel",),
            vmem_limit_bytes=_VMEM_LIMIT),
    )(a_pad, hw, b)


def _stream_final_call(a_pad, hw, b, wc, bc, tm):
    n_pad = a_pad.shape[0]
    return pl.pallas_call(
        gcn_stream_final_kernel,
        out_shape=(jax.ShapeDtypeStruct((n_pad, F_PAD), jnp.float32),
                   jax.ShapeDtypeStruct((n_pad, F_PAD), jnp.float32)),
        grid_spec=pltpu.PrefetchScalarGridSpec(
            num_scalar_prefetch=0,
            grid=(n_pad // tm,),
            in_specs=[pl.BlockSpec((tm, n_pad), lambda i: (i, 0)),
                      pl.BlockSpec((n_pad, F_PAD), lambda i: (0, 0)),
                      pl.BlockSpec((1, F_PAD), lambda i: (0, 0)),
                      pl.BlockSpec((F_PAD, F_PAD), lambda i: (0, 0)),
                      pl.BlockSpec((1, F_PAD), lambda i: (0, 0))],
            out_specs=(pl.BlockSpec((tm, F_PAD), lambda i: (i, 0)),
                       pl.BlockSpec((tm, F_PAD), lambda i: (i, 0))),
        ),
        compiler_params=pltpu.CompilerParams(
            dimension_semantics=("parallel",),
            vmem_limit_bytes=_VMEM_LIMIT),
    )(a_pad, hw, b, wc, bc)


# ------------------------------- JAX wrapper -------------------------------- #
@jax.jit
def gcn_forward(a_pad, x, params):
    """a_pad: [n_pad, n_pad] bf16 normalized adjacency (already 128-padded).
       x:     [n, num_features] f32 node features.
       Returns (logits [n, num_classes], h [n, 2])."""
    n, nf = x.shape
    n_pad = a_pad.shape[0]
    num_classes = params["wc"].shape[1]
    assert nf <= F_PAD and num_classes <= F_PAD

    # Pad tiny operands to lane-dense 128-wide layouts (zero padding keeps
    # padded feature columns exactly zero through every layer).
    x_pad = _pad2(x, n_pad, F_PAD).astype(jnp.bfloat16)
    w_stack = jnp.stack([_pad2(params["w1"], F_PAD, F_PAD),
                         _pad2(params["w2"], F_PAD, F_PAD),
                         _pad2(params["w3"], F_PAD, F_PAD)]).astype(jnp.bfloat16)
    b_stack = jnp.stack([_pad2(params["b1"], 1, F_PAD),
                         _pad2(params["b2"], 1, F_PAD),
                         _pad2(params["b3"], 1, F_PAD)]).astype(jnp.float32)
    wc = _pad2(params["wc"], F_PAD, F_PAD).astype(jnp.bfloat16)
    bc = _pad2(params["bc"], 1, F_PAD).astype(jnp.float32)

    # VMEM estimate for the A-resident fused kernel (double buffers included).
    fused_vmem = (2 * n_pad * n_pad * 2        # A_hat bf16 (x2 buffers)
                  + 2 * n_pad * F_PAD * 2      # X bf16
                  + 4 * n_pad * F_PAD * 4      # out + h_out f32
                  + n_pad * F_PAD * 4          # H scratch f32
                  + (1 << 20))                 # weights / margin

    if fused_vmem <= (40 << 20):
        # --- A-resident fused path: A_hat read from HBM exactly once. ---
        out_pad, h_pad = _fused_call(a_pad, x_pad, w_stack, b_stack, wc, bc)
    else:
        # --- Streaming fallback: full-K row strips, HW precomputed per layer,
        #     bf16 inter-layer H (A_hat streamed once per layer). ---
        tm = 128
        for cand in (1024, 512, 256):
            if (n_pad % cand == 0 and n_pad // cand >= 2
                    and 2 * cand * n_pad * 2 <= (24 << 20)):
                tm = cand
                break
        h = x_pad
        out_pad = h_pad = None
        for l in range(3):
            hw = _proj_call(h, w_stack[l], tm)
            if l < 2:
                h = _stream_layer_call(a_pad, hw, b_stack[l], tm)
            else:
                out_pad, h_pad = _stream_final_call(a_pad, hw, b_stack[l],
                                                    wc, bc, tm)

    return out_pad[:n, :num_classes], h_pad[:n, :2]


# ------------------------------- graph glue --------------------------------- #
def normalized_adjacency_padded(edge_index, num_nodes, n_pad):
    """A_hat = D^{-1/2}(A + I)D^{-1/2}, built directly as bf16 and 128-padded.

    Padded rows/cols have zero degree -> exactly zero in A_hat.
    """
    # TODO(synk): dense [N,N] A_hat is O(N^2) HBM; a CSR / blocked-gather
    # formulation would be needed for large sparse graphs.
    src, dst = edge_index[0], edge_index[1]
    a = jnp.zeros((n_pad, n_pad), jnp.float32)
    a = a.at[dst, src].add(1.0)                                   # src -> dst
    idx = jnp.arange(num_nodes)
    a = a.at[idx, idx].add(1.0)                                   # self-loops
    deg = a.sum(axis=1)
    d_inv_sqrt = jnp.where(deg > 0, jax.lax.rsqrt(deg), 0.0)
    a_hat = d_inv_sqrt[:, None] * a * d_inv_sqrt[None, :]
    return a_hat.astype(jnp.bfloat16)


def init_params(key, num_features, num_classes):
    """Deterministic synthetic parameters (glorot-style scaling)."""
    dims = [(num_features, 4), (4, 4), (4, 2), (2, num_classes)]
    names = ["1", "2", "3", "c"]
    params = {}
    for name, (fan_in, fan_out) in zip(names, dims):
        key, kw, kb = jax.random.split(key, 3)
        scale = (6.0 / (fan_in + fan_out)) ** 0.5
        params["w" + name] = jax.random.uniform(
            kw, (fan_in, fan_out), jnp.float32, -scale, scale)
        params["b" + name] = jax.random.uniform(
            kb, (1, fan_out), jnp.float32, -0.1, 0.1)
    return params


def reference_forward(a_hat, x, p):
    h = jnp.tanh(a_hat @ (x @ p["w1"]) + p["b1"])
    h = jnp.tanh(a_hat @ (h @ p["w2"]) + p["b2"])
    h = jnp.tanh(a_hat @ (h @ p["w3"]) + p["b3"])
    return h @ p["wc"] + p["bc"], h


def reference_forward_bf16(a_hat_f32, x, p):
    """Reference mimicking the kernel's bf16 casts (A already bf16-rounded)."""
    def rb(v):
        return v.astype(jnp.bfloat16).astype(jnp.float32)

    h = rb(x)
    for w, b in [(p["w1"], p["b1"]), (p["w2"], p["b2"]), (p["w3"], p["b3"])]:
        hw = rb(rb(h) @ rb(w))
        h = jnp.tanh(a_hat_f32 @ hw + b)
    out = rb(h) @ rb(p["wc"]) + p["bc"]
    return out, h


# ----------------------------------- main ------------------------------------ #
if __name__ == "__main__":
    num_nodes = 8
    num_features = 4
    num_classes = 4

    key = jax.random.PRNGKey(0)
    key, kx = jax.random.split(key)
    x = jax.random.normal(kx, (num_nodes, num_features), jnp.float32)

    # small undirected ring graph: edge_index has shape [2, 2*num_nodes]
    src = jnp.arange(num_nodes, dtype=jnp.int32)
    dst = (src + 1) % num_nodes
    edge_index = jnp.stack(
        [jnp.concatenate([src, dst]), jnp.concatenate([dst, src])], axis=0)

    n_pad = _round_up(num_nodes, 128)
    a_pad = normalized_adjacency_padded(edge_index, num_nodes, n_pad)
    params = init_params(key, num_features, num_classes)

    out, h = gcn_forward(a_pad, x, params)
    jax.block_until_ready((out, h))

    assert out.shape == (num_nodes, num_classes) and h.shape == (num_nodes, 2)

    a_f32 = a_pad[:num_nodes, :num_nodes].astype(jnp.float32)

    # Tight check vs a reference with matching bf16 casts.
    out_rb, h_rb = reference_forward_bf16(a_f32, x, params)
    assert jnp.allclose(out, out_rb, atol=2e-3), float(jnp.abs(out - out_rb).max())
    assert jnp.allclose(h, h_rb, atol=2e-3), float(jnp.abs(h - h_rb).max())

    # Loose check vs the full-f32 reference (bf16 rounding tolerance).
    out_rf, h_rf = reference_forward(a_f32, x, params)
    assert jnp.allclose(out, out_rf, atol=5e-2)
    assert jnp.allclose(h, h_rf, atol=5e-2)

    print("KERNEL_OK")
</pallas_src>

<mosaic_0001>
module attributes {stable_mosaic.version = 11 : i64} {
  func.func @gcn_fused_kernel(%arg0: i32, %arg1: memref<128x128xbf16, #tpu.memory_space<vmem>>, %arg2: memref<128x128xbf16, #tpu.memory_space<vmem>>, %arg3: memref<1x128x128xbf16, #tpu.memory_space<vmem>>, %arg4: memref<1x1x128xf32, #tpu.memory_space<vmem>>, %arg5: memref<128x128xbf16, #tpu.memory_space<vmem>>, %arg6: memref<1x128xf32, #tpu.memory_space<vmem>>, %arg7: memref<128x128xf32, #tpu.memory_space<vmem>>, %arg8: memref<128x128xf32, #tpu.memory_space<vmem>>, %arg9: memref<128x128xf32, #tpu.memory_space<vmem>>) attributes {dimension_semantics = [#tpu.dimension_semantics<arbitrary>], iteration_bounds = array<i64: 3>, scalar_prefetch = 0 : i64, scratch_operands = 1 : i64, tpu.core_type = #tpu.core_type<tc>, window_params = [{pipeline_mode = #tpu.pipeline_mode<synchronous>, transform_indices = @transform_0, window_bounds = array<i64: 128, 128>}, {pipeline_mode = #tpu.pipeline_mode<synchronous>, transform_indices = @transform_1, window_bounds = array<i64: 128, 128>}, {transform_indices = @transform_2, window_bounds = array<i64: 1, 128, 128>}, {transform_indices = @transform_3, window_bounds = array<i64: 1, 1, 128>}, {pipeline_mode = #tpu.pipeline_mode<synchronous>, transform_indices = @transform_4, window_bounds = array<i64: 128, 128>}, {pipeline_mode = #tpu.pipeline_mode<synchronous>, transform_indices = @transform_5, window_bounds = array<i64: 1, 128>}, {pipeline_mode = #tpu.pipeline_mode<synchronous>, transform_indices = @transform_6, window_bounds = array<i64: 128, 128>}, {pipeline_mode = #tpu.pipeline_mode<synchronous>, transform_indices = @transform_7, window_bounds = array<i64: 128, 128>}]} {
    %c0_i32 = arith.constant 0 : i32
    %0 = arith.cmpi eq, %arg0, %c0_i32 : i32
    %1 = arith.extui %0 : i1 to i32
    %c0_i32_0 = arith.constant 0 : i32
    %2 = arith.cmpi ne, %1, %c0_i32_0 : i32
    scf.if %2 {
      %c0_14 = arith.constant 0 : index
      %c0_15 = arith.constant 0 : index
      %20 = vector.load %arg2[%c0_14, %c0_15] : memref<128x128xbf16, #tpu.memory_space<vmem>>, vector<128x128xbf16>
      %21 = arith.extf %20 : vector<128x128xbf16> to vector<128x128xf32>
      %c0_16 = arith.constant 0 : index
      %c0_17 = arith.constant 0 : index
      %22 = vector.load %arg9[%c0_16, %c0_17] : memref<128x128xf32, #tpu.memory_space<vmem>>, vector<128x128xf32>
      tpu.vector_store %arg9[%c0_16, %c0_17], %21 {strides = array<i32>} : memref<128x128xf32, #tpu.memory_space<vmem>>, vector<128x128xf32>,
    } else {
    }
    %c0 = arith.constant 0 : index
    %c0_1 = arith.constant 0 : index
    %3 = vector.load %arg9[%c0, %c0_1] : memref<128x128xf32, #tpu.memory_space<vmem>>, vector<128x128xf32>
    %4 = arith.truncf %3 : vector<128x128xf32> to vector<128x128xbf16>
    %c0_2 = arith.constant 0 : index
    %c0_3 = arith.constant 0 : index
    %c0_4 = arith.constant 0 : index
    %5 = vector.load %arg3[%c0_2, %c0_3, %c0_4] : memref<1x128x128xbf16, #tpu.memory_space<vmem>>, vector<1x128x128xbf16>
    %6 = vector.shape_cast %5 : vector<1x128x128xbf16> to vector<128x128xbf16>
    %cst = arith.constant dense<0.000000e+00> : vector<128x128xf32>
    %7 = tpu.matmul %4, %6, %cst {dimension_numbers = #tpu.dot_dimension_numbers<[1], [0], [0], [1], [0, 0, 1, 1], [], []>} : vector<128x128xbf16>, vector<128x128xbf16>, vector<128x128xf32> -> vector<128x128xf32>
    %c0_5 = arith.constant 0 : index
    %c0_6 = arith.constant 0 : index
    %8 = vector.load %arg1[%c0_5, %c0_6] : memref<128x128xbf16, #tpu.memory_space<vmem>>, vector<128x128xbf16>
    %9 = arith.truncf %7 : vector<128x128xf32> to vector<128x128xbf16>
    %cst_7 = arith.constant dense<0.000000e+00> : vector<128x128xf32>
    %10 = tpu.matmul %8, %9, %cst_7 {dimension_numbers = #tpu.dot_dimension_numbers<[1], [0], [0], [1], [0, 0, 1, 1], [], []>} : vector<128x128xbf16>, vector<128x128xbf16>, vector<128x128xf32> -> vector<128x128xf32>
    %c0_8 = arith.constant 0 : index
    %c0_9 = arith.constant 0 : index
    %c0_10 = arith.constant 0 : index
    %11 = vector.load %arg4[%c0_8, %c0_9, %c0_10] : memref<1x1x128xf32, #tpu.memory_space<vmem>>, vector<1x1x128xf32>
    %12 = vector.shape_cast %11 : vector<1x1x128xf32> to vector<1x128xf32>
    %13 = vector.broadcast %12 : vector<1x128xf32> to vector<128x128xf32>
    %14 = arith.addf %10, %13 : vector<128x128xf32>
    %15 = math.tanh %14 : vector<128x128xf32>
    %c0_11 = arith.constant 0 : index
    %c0_12 = arith.constant 0 : index
    %16 = vector.load %arg9[%c0_11, %c0_12] : memref<128x128xf32, #tpu.memory_space<vmem>>, vector<128x128xf32>
    tpu.vector_store %arg9[%c0_11, %c0_12], %15 {strides = array<i32>} : memref<128x128xf32, #tpu.memory_space<vmem>>, vector<128x128xf32>,
    %c2_i32 = arith.constant 2 : i32
    %17 = arith.cmpi eq, %arg0, %c2_i32 : i32
    %18 = arith.extui %17 : i1 to i32
    %c0_i32_13 = arith.constant 0 : i32
    %19 = arith.cmpi ne, %18, %c0_i32_13 : i32
    scf.if %19 {
      %c0_14 = arith.constant 0 : index
      %c0_15 = arith.constant 0 : index
      %20 = vector.load %arg8[%c0_14, %c0_15] : memref<128x128xf32, #tpu.memory_space<vmem>>, vector<128x128xf32>
      tpu.vector_store %arg8[%c0_14, %c0_15], %15 {strides = array<i32>} : memref<128x128xf32, #tpu.memory_space<vmem>>, vector<128x128xf32>,
      %21 = arith.truncf %15 : vector<128x128xf32> to vector<128x128xbf16>
      %c0_16 = arith.constant 0 : index
      %c0_17 = arith.constant 0 : index
      %22 = vector.load %arg5[%c0_16, %c0_17] : memref<128x128xbf16, #tpu.memory_space<vmem>>, vector<128x128xbf16>
      %cst_18 = arith.constant dense<0.000000e+00> : vector<128x128xf32>
      %23 = tpu.matmul %21, %22, %cst_18 {dimension_numbers = #tpu.dot_dimension_numbers<[1], [0], [0], [1], [0, 0, 1, 1], [], []>} : vector<128x128xbf16>, vector<128x128xbf16>, vector<128x128xf32> -> vector<128x128xf32>
      %c0_19 = arith.constant 0 : index
      %c0_20 = arith.constant 0 : index
      %24 = vector.load %arg6[%c0_19, %c0_20] : memref<1x128xf32, #tpu.memory_space<vmem>>, vector<1x128xf32>
      %25 = vector.broadcast %24 : vector<1x128xf32> to vector<128x128xf32>
      %26 = arith.addf %23, %25 : vector<128x128xf32>
      %c0_21 = arith.constant 0 : index
      %c0_22 = arith.constant 0 : index
      %27 = vector.load %arg7[%c0_21, %c0_22] : memref<128x128xf32, #tpu.memory_space<vmem>>, vector<128x128xf32>
      tpu.vector_store %arg7[%c0_21, %c0_22], %26 {strides = array<i32>} : memref<128x128xf32, #tpu.memory_space<vmem>>, vector<128x128xf32>,
    } else {
    }
    return
  }
  func.func @transform_0(%arg0: i32) -> (i32, i32) {
    %c0_i32 = arith.constant 0 : i32
    %c0_i32_0 = arith.constant 0 : i32
    %c0_i32_1 = arith.constant 0 : i32
    return %c0_i32, %c0_i32_0 : i32, i32
  }
  func.func @transform_1(%arg0: i32) -> (i32, i32) {
    %c0_i32 = arith.constant 0 : i32
    %c0_i32_0 = arith.constant 0 : i32
    %c0_i32_1 = arith.constant 0 : i32
    return %c0_i32, %c0_i32_0 : i32, i32
  }
  func.func @transform_2(%arg0: i32) -> (i32, i32, i32) {
    %c0_i32 = arith.constant 0 : i32
    %c0_i32_0 = arith.constant 0 : i32
    %c0_i32_1 = arith.constant 0 : i32
    return %arg0, %c0_i32, %c0_i32_0 : i32, i32, i32
  }
  func.func @transform_3(%arg0: i32) -> (i32, i32, i32) {
    %c0_i32 = arith.constant 0 : i32
    %c0_i32_0 = arith.constant 0 : i32
    %c0_i32_1 = arith.constant 0 : i32
    return %arg0, %c0_i32, %c0_i32_0 : i32, i32, i32
  }
  func.func @transform_4(%arg0: i32) -> (i32, i32) {
    %c0_i32 = arith.constant 0 : i32
    %c0_i32_0 = arith.constant 0 : i32
    %c0_i32_1 = arith.constant 0 : i32
    return %c0_i32, %c0_i32_0 : i32, i32
  }
  func.func @transform_5(%arg0: i32) -> (i32, i32) {
    %c0_i32 = arith.constant 0 : i32
    %c0_i32_0 = arith.constant 0 : i32
    %c0_i32_1 = arith.constant 0 : i32
    return %c0_i32, %c0_i32_0 : i32, i32
  }
  func.func @transform_6(%arg0: i32) -> (i32, i32) {
    %c0_i32 = arith.constant 0 : i32
    %c0_i32_0 = arith.constant 0 : i32
    %c0_i32_1 = arith.constant 0 : i32
    return %c0_i32, %c0_i32_0 : i32, i32
  }
  func.func @transform_7(%arg0: i32) -> (i32, i32) {
    %c0_i32 = arith.constant 0 : i32
    %c0_i32_0 = arith.constant 0 : i32
    %c0_i32_1 = arith.constant 0 : i32
    return %c0_i32, %c0_i32_0 : i32, i32
  }
}

</mosaic_0001>

<bundles_post_ra>
// kernel: gcn_forward.1
= control target key start
LH: loop header
LB: loop body
LE: loop exit
PB: predicated region body
PF: predicated region fallthrough
CT: control target
= control target key end

     0   :  { %s1325_s24 = smov 0   ;;  %s1608_s0 = inlined_call_operand.vmem [shape: bf16[128,128], index: 0, kind: input, shape index: {}]   ;;  %s1609_s1 = inlined_call_operand.vmem [shape: bf16[128,128], index: 1, kind: input, shape index: {}]   ;;  %s1610_s2 = inlined_call_operand.vmem [shape: bf16[3,128,128], index: 2, kind: input, shape index: {}]   ;;  %s1611_s3 = inlined_call_operand.vmem [shape: f32[3,1,128], index: 3, kind: input, shape index: {}]   ;;  %s1612_s4 = inlined_call_operand.vmem [shape: bf16[128,128], index: 4, kind: input, shape index: {}]   ;;  %s1613_s5 = inlined_call_operand.vmem [shape: f32[1,128], index: 5, kind: input, shape index: {}]   ;;  %s1614_s6 = inlined_call_operand.vmem [shape: f32[128,128], index: 6, kind: output, shape index: {0}]   ;;  %s1615_s7 = inlined_call_operand.vmem [shape: f32[128,128], index: 7, kind: output, shape index: {1}]  }
   0x1 LB: > { %s1331_s25 = sadd.s32 4294967295, %s1283_s24   ;;  %p980_p0 = scmp.ge.s32.totalorder %s1283_s24, 1  ;;  %s1283_s24 = sphi %s1325_s24, %s18_s24  }
   0x2   : > { %p238_p1 = scmp.lt.s32.totalorder %s1283_s24, 4 }
   0x4   : > { %p239_p2 = pnand %p980_p0, %p238_p1 }
   0x5   : > { %p268_p3 = scmp.lt.s32.totalorder (!%p239_p2), %s1331_s25, 2  ;;  %p983_p4 = scmp.ne.s32.totalorder (!%p239_p2), %s1331_s25, 0 }
   0x6   : > { %242 = sbr.rel (%p239_p2) target bundleno = 780 (0x30c), region = 44 }
   0xd   : > { %s1337_s26 = scalar_select %p268_p3, %s1331_s25, 2 }
   0xe   : > { %280 = sbr.rel (%p983_p4) target bundleno = 25 (0x19), region = 48  ;;  %v1015_v0 = vld [vmem:[%s1609_s1] sm:$0xff] (!%p983_p4)   ;;  %v1046_v1 = vld [vmem:[%s1609_s1 + $0x8] sm:$0xff] (!%p983_p4)   ;;  %v1047_v2 = vld [vmem:[%s1609_s1 + $0x10] sm:$0xff] (!%p983_p4)  }
   0xf   : > { %s1013_s27 = sshll.u32 %s1337_s26, 6  ;;  %s275_s30 = scalar_lea.vmem %s1611_s3, %s1337_s26  ;;  %v1016_v3 = vunpack.c.l.bf16 (!%p983_p4), %v1015_v0  ;;  %v1017_v4 = vunpack.c.h.bf16 (!%p983_p4), %v1015_v0  ;;  %v1020_v5 = vunpack.c.l.bf16 (!%p983_p4), %v1046_v1  ;;  %v1021_v6 = vunpack.c.h.bf16 (!%p983_p4), %v1046_v1  ;;  %v1048_v7 = vld [vmem:[%s1609_s1 + $0x18] sm:$0xff] (!%p983_p4)   ;;  %v1049_v8 = vld [vmem:[%s1609_s1 + $0x20] sm:$0xff] (!%p983_p4)   ;;  %v1050_v9 = vld [vmem:[%s1609_s1 + $0x28] sm:$0xff] (!%p983_p4)  }
  0x10   : > { %s1347_s10 = scalar_lea.vmem %s1610_s2, %s1013_s27  ;;  %v1024_v10 = vunpack.c.l.bf16 (!%p983_p4), %v1047_v2  ;;  %v1025_v11 = vunpack.c.h.bf16 (!%p983_p4), %v1047_v2  ;;  %v1028_v12 = vunpack.c.l.bf16 (!%p983_p4), %v1048_v7  ;;  %v1029_v13 = vunpack.c.h.bf16 (!%p983_p4), %v1048_v7  ;;  %v1051_v14 = vld [vmem:[%s1609_s1 + $0x30] sm:$0xff] (!%p983_p4)   ;;  %v1052_v15 = vld [vmem:[%s1609_s1 + $0x38] sm:$0xff] (!%p983_p4)  }
  0x11   : > { %313 = vst [vmem:[#allocation2] sm:$0xff] (!%p983_p4), %v1016_v3  ;;  %314 = vst [vmem:[#allocation2 + $0x8] sm:$0xff] (!%p983_p4), %v1017_v4  ;;  %v1032_v16 = vunpack.c.l.bf16 (!%p983_p4), %v1049_v8  ;;  %v1033_v17 = vunpack.c.h.bf16 (!%p983_p4), %v1049_v8  ;;  %v1036_v18 = vunpack.c.l.bf16 (!%p983_p4), %v1050_v9  ;;  %v1037_v19 = vunpack.c.h.bf16 (!%p983_p4), %v1050_v9 }
  0x12   : > { %315 = vst [vmem:[#allocation2 + $0x10] sm:$0xff] (!%p983_p4), %v1020_v5  ;;  %316 = vst [vmem:[#allocation2 + $0x18] sm:$0xff] (!%p983_p4), %v1021_v6  ;;  %v1040_v20 = vunpack.c.l.bf16 (!%p983_p4), %v1051_v14  ;;  %v1041_v21 = vunpack.c.h.bf16 (!%p983_p4), %v1051_v14  ;;  %v1044_v22 = vunpack.c.l.bf16 (!%p983_p4), %v1052_v15  ;;  %v1045_v23 = vunpack.c.h.bf16 (!%p983_p4), %v1052_v15 }
  0x13   : > { %317 = vst [vmem:[#allocation2 + $0x20] sm:$0xff] (!%p983_p4), %v1024_v10  ;;  %318 = vst [vmem:[#allocation2 + $0x28] sm:$0xff] (!%p983_p4), %v1025_v11 }
  0x14   : > { %319 = vst [vmem:[#allocation2 + $0x30] sm:$0xff] (!%p983_p4), %v1028_v12  ;;  %320 = vst [vmem:[#allocation2 + $0x38] sm:$0xff] (!%p983_p4), %v1029_v13 }
  0x15   : > { %321 = vst [vmem:[#allocation2 + $0x40] sm:$0xff] %v1032_v16  ;;  %322 = vst [vmem:[#allocation2 + $0x48] sm:$0xff] %v1033_v17 }
  0x16   : > { %323 = vst [vmem:[#allocation2 + $0x50] sm:$0xff] %v1036_v18  ;;  %324 = vst [vmem:[#allocation2 + $0x58] sm:$0xff] %v1037_v19 }
  0x17   : > { %325 = vst [vmem:[#allocation2 + $0x60] sm:$0xff] %v1040_v20  ;;  %326 = vst [vmem:[#allocation2 + $0x68] sm:$0xff] %v1041_v21 }
  0x18   : > { %327 = vst [vmem:[#allocation2 + $0x70] sm:$0xff] %v1044_v22  ;;  %328 = vst [vmem:[#allocation2 + $0x78] sm:$0xff] %v1045_v23 }
  0x19 PF: > { %v1221_v24 = vld [vmem:[%s1347_s10] sm:$0xff]   ;;  %v1222_v25 = vld [vmem:[%s1347_s10 + $0x8] sm:$0xff]   ;;  %v1223_v26 = vld [vmem:[%s1347_s10 + $0x10] sm:$0xff]   ;;  %p1001_p5 = scmp.ne.s32.totalorder %s1331_s25, 2 }
  0x1a   : > { %1101 = vmatprep.subr.bf16.mxu0 %v1221_v24  ;;  %v1224_v27 = vld [vmem:[%s1347_s10 + $0x18] sm:$0xff]   ;;  %v1225_v31 = vld [vmem:[%s1347_s10 + $0x20] sm:$0xff]   ;;  %v1226_v32 = vld [vmem:[%s1347_s10 + $0x28] sm:$0xff]  }
  0x1b   : > { %1102 = vmatpush3.bf16.msra.mxu0 %v1221_v24  ;;  %v1227_v33 = vld [vmem:[%s1347_s10 + $0x30] sm:$0xff]   ;;  %v1228_v34 = vld [vmem:[%s1347_s10 + $0x38] sm:$0xff]   ;;  %v1229_v56 = vld [vmem:[%s1608_s0] sm:$0xff]  }
  0x1c   : > { %1103 = vmatprep.subr.bf16.mxu0 %v1222_v25  ;;  %v329_v28 = vld [vmem:[#allocation2] sm:$0xff]  ;;  %v330_v29 = vld [vmem:[#allocation2 + $0x8] sm:$0xff]  ;;  %1149 = vmatprep.mubr.bf16.mxu1 %v1229_v56  ;;  %v1231_v18 = vld [vmem:[%s1608_s0 + $0x10] sm:$0xff]  }
  0x1d   : > { %v345_v30 = vpack.c.bf16 %v330_v29, %v329_v28  ;;  %v331_v35 = vld [vmem:[#allocation2 + $0x10] sm:$0xff]  ;;  %v332_v36 = vld [vmem:[#allocation2 + $0x18] sm:$0xff]  ;;  %v1230_v17 = vld [vmem:[%s1608_s0 + $0x8] sm:$0xff]  }
  0x1e   : > { %v333_v37 = vld [vmem:[#allocation2 + $0x20] sm:$0xff]  ;;  %v334_v38 = vld [vmem:[#allocation2 + $0x28] sm:$0xff]  ;;  %v346_v39 = vpack.c.bf16 %v332_v36, %v331_v35  ;;  %v339_v47 = vld [vmem:[#allocation2 + $0x50] sm:$0xff] }
  0x1f   : > { %1104 = vmatpush3.bf16.msra.mxu0 %v1222_v25  ;;  %1117 = vmatprep.mubr.bf16.mxu0 %v345_v30  ;;  %v347_v40 = vpack.c.bf16 %v334_v38, %v333_v37  ;;  %v335_v41 = vld [vmem:[#allocation2 + $0x30] sm:$0xff]  ;;  %v336_v42 = vld [vmem:[#allocation2 + $0x38] sm:$0xff]  ;;  %v341_v49 = vld [vmem:[#allocation2 + $0x60] sm:$0xff] }
  0x20   : > { %1105 = vmatprep.subr.bf16.mxu0 %v1223_v26  ;;  %v337_v43 = vld [vmem:[#allocation2 + $0x40] sm:$0xff]  ;;  %v338_v44 = vld [vmem:[#allocation2 + $0x48] sm:$0xff]  ;;  %v348_v45 = vpack.c.bf16 %v336_v42, %v335_v41  ;;  %v340_v48 = vld [vmem:[#allocation2 + $0x58] sm:$0xff] }
  0x21   : > { %v349_v46 = vpack.c.bf16 %v338_v44, %v337_v43  ;;  %v342_v50 = vld [vmem:[#allocation2 + $0x68] sm:$0xff]  ;;  %v350_v51 = vpack.c.bf16 %v340_v48, %v339_v47  ;;  %v343_v53 = vld [vmem:[#allocation2 + $0x70] sm:$0xff]  ;;  %v344_v54 = vld [vmem:[#allocation2 + $0x78] sm:$0xff] }
  0x22   : > { %v351_v52 = vpack.c.bf16 %v342_v50, %v341_v49  ;;  %v352_v55 = vpack.c.bf16 %v344_v54, %v343_v53  ;;  %v1232_v19 = vld [vmem:[%s1608_s0 + $0x18] sm:$0xff]   ;;  %v1233_v20 = vld [vmem:[%s1608_s0 + $0x20] sm:$0xff]   ;;  %v1234_v21 = vld [vmem:[%s1608_s0 + $0x28] sm:$0xff]  }
  0x23   : > { %1106 = vmatpush3.bf16.msra.mxu0 %v1223_v26  ;;  %v1235_v22 = vld [vmem:[%s1608_s0 + $0x30] sm:$0xff]   ;;  %v1236_v23 = vld [vmem:[%s1608_s0 + $0x38] sm:$0xff]   ;;  %v992_v24 = vld [vmem:[%s275_s30] ss:$0 sm:$0xff] }
  0x24   : > { %1107 = vmatprep.subr.bf16.mxu0 %v1224_v27 }
  0x27   : > { %1108 = vmatpush3.bf16.msra.mxu0 %v1224_v27 }
  0x28   : > { %1109 = vmatprep.subr.bf16.mxu0 %v1225_v31 }
  0x2b   : > { %1110 = vmatpush3.bf16.msra.mxu0 %v1225_v31 }
  0x2c   : > { %1111 = vmatprep.subr.bf16.mxu0 %v1226_v32 }
  0x2f   : > { %1112 = vmatpush3.bf16.msra.mxu0 %v1226_v32 }
  0x30   : > { %1113 = vmatprep.subr.bf16.mxu0 %v1227_v33 }
  0x33   : > { %1114 = vmatpush3.bf16.msra.mxu0 %v1227_v33 }
  0x34   : > { %1115 = vmatprep.subr.bf16.mxu0 %v1228_v34 }
  0x37   : > { %1116 = vmatpush3.bf16.msra.mxu0 %v1228_v34 }
  0x3a   : > { %1118 = vmatmul.mubr.bf16.vlgmr.msra.gmra.mrb[0].mxu0 %v346_v39 }
  0x3b   : > { %1121 = vmatprep.mubr.bf16.mxu0 %v347_v40 }
  0x42   : > { %1122 = vmatmul.mubr.bf16.gmra.mrb[4].mxu0 %v348_v45 }
  0x43   : > { %1125 = vmatprep.mubr.bf16.mxu0 %v349_v46 }
  0x4a   : > { %1126 = vmatmul.mubr.bf16.gmra.mrb[8].mxu0 %v350_v51 }
  0x4b   : > { %1129 = vmatprep.mubr.bf16.mxu0 %v351_v52 }
  0x52   : > { %1130 = vmatmul.mubr.bf16.gmra.mrb[12].mxu0 %v352_v55 }
 0x10d   : > { %v1119_v57 = vpop.f32.mrb[0].mxu0 }
 0x10e   : > { %v451_v58 = vpop.f32.mrb[1].mxu0 }
 0x10f   : > { %v1120_v59 = vpop.f32.mrb[2].mxu0 }
 0x110   : > { %v531_v60 = vpack.c.bf16 %v1120_v59, %v1119_v57  ;;  %v454_v61 = vpop.f32.mrb[3].mxu0 }
 0x111   : > { %v530_v62 = vpack.c.bf16 %v454_v61, %v451_v58 }
 0x113   : > { %1133 = vmatprep.subr.bf16.mxu1 %v530_v62 }
 0x114   : > { %1134 = vmatpush3.bf16.msra.mxu1 %v530_v62 }
 0x115   : > { %v1123_v63 = vpop.f32.mrb[4].mxu0  ;;  %1135 = vmatprep.subr.bf16.mxu1 %v531_v60 }
 0x116   : > { %v467_v0 = vpop.f32.mrb[5].mxu0 }
 0x117   : > { %v1124_v1 = vpop.f32.mrb[6].mxu0 }
 0x118   : > { %v533_v2 = vpack.c.bf16 %v1124_v1, %v1123_v63  ;;  %v470_v3 = vpop.f32.mrb[7].mxu0  ;;  %1136 = vmatpush3.bf16.msra.mxu1 %v531_v60 }
 0x119   : > { %v532_v4 = vpack.c.bf16 %v470_v3, %v467_v0 }
 0x11b   : > { %1137 = vmatprep.subr.bf16.mxu1 %v532_v4 }
 0x11c   : > { %1138 = vmatpush3.bf16.msra.mxu1 %v532_v4 }
 0x11d   : > { %v1127_v5 = vpop.f32.mrb[8].mxu0  ;;  %1139 = vmatprep.subr.bf16.mxu1 %v533_v2 }
 0x11e   : > { %v483_v6 = vpop.f32.mrb[9].mxu0 }
 0x11f   : > { %v1128_v7 = vpop.f32.mrb[10].mxu0 }
 0x120   : > { %v535_v8 = vpack.c.bf16 %v1128_v7, %v1127_v5  ;;  %v486_v9 = vpop.f32.mrb[11].mxu0  ;;  %1140 = vmatpush3.bf16.msra.mxu1 %v533_v2 }
 0x121   : > { %v534_v10 = vpack.c.bf16 %v486_v9, %v483_v6  ;;  %v1269_v9 = vld [vmem:[%s1612_s4] sm:$0xff] (!%p1001_p5)  }
 0x122   : > { %1165 = vmatprep.subr.bf16.mxu0 (!%p1001_p5), %v1269_v9 }
 0x123   : > { %1141 = vmatprep.subr.bf16.mxu1 %v534_v10  ;;  %1166 = vmatpush3.bf16.msra.mxu0 (!%p1001_p5), %v1269_v9 }
 0x124   : > { %1142 = vmatpush3.bf16.msra.mxu1 %v534_v10  ;;  %v1270_v10 = vld [vmem:[%s1612_s4 + $0x8] sm:$0xff] (!%p1001_p5)  }
 0x125   : > { %v1131_v11 = vpop.f32.mrb[12].mxu0  ;;  %1143 = vmatprep.subr.bf16.mxu1 %v535_v8  ;;  %1167 = vmatprep.subr.bf16.mxu0 (!%p1001_p5), %v1270_v10 }
 0x126   : > { %v499_v12 = vpop.f32.mrb[13].mxu0 }
 0x127   : > { %v1132_v13 = vpop.f32.mrb[14].mxu0  ;;  %1168 = vmatpush3.bf16.msra.mxu0 (!%p1001_p5), %v1270_v10 }
 0x128   : > { %v537_v14 = vpack.c.bf16 %v1132_v13, %v1131_v11  ;;  %v502_v15 = vpop.f32.mrb[15].mxu0  ;;  %1144 = vmatpush3.bf16.msra.mxu1 %v535_v8  ;;  %v1271_v13 = vld [vmem:[%s1612_s4 + $0x10] sm:$0xff] (!%p1001_p5)  }
 0x129   : > { %v536_v16 = vpack.c.bf16 %v502_v15, %v499_v12  ;;  %1169 = vmatprep.subr.bf16.mxu0 (!%p1001_p5), %v1271_v13  ;;  %v1273_v15 = vld [vmem:[%s1612_s4 + $0x20] sm:$0xff] (!%p1001_p5)  }
 0x12b   : > { %1145 = vmatprep.subr.bf16.mxu1 %v536_v16  ;;  %1170 = vmatpush3.bf16.msra.mxu0 (!%p1001_p5), %v1271_v13 }
 0x12c   : > { %1146 = vmatpush3.bf16.msra.mxu1 %v536_v16  ;;  %v1274_v16 = vld [vmem:[%s1612_s4 + $0x28] sm:$0xff] (!%p1001_p5)  }
 0x12d   : > { %1147 = vmatprep.subr.bf16.mxu1 %v537_v14 }
 0x130   : > { %1148 = vmatpush3.bf16.msra.mxu1 %v537_v14  ;;  %v1272_v14 = vld [vmem:[%s1612_s4 + $0x18] sm:$0xff] (!%p1001_p5)  }
 0x131   : > { %1197 = vmatprep.subr.bf16.mxu1 (!%p1001_p5), %v1269_v9  ;;  %1171 = vmatprep.subr.bf16.mxu0 (!%p1001_p5), %v1272_v14 }
 0x132   : > { %1172 = vmatpush3.bf16.msra.mxu0 (!%p1001_p5), %v1272_v14 }
 0x133   : > { %1150 = vmatmul.mubr.bf16.vlgmr.msra.gmra.mrb[0].mxu1 %v1230_v17  ;;  %1173 = vmatprep.subr.bf16.mxu0 (!%p1001_p5), %v1273_v15  ;;  %v1275_v17 = vld [vmem:[%s1612_s4 + $0x30] sm:$0xff] (!%p1001_p5)  }
 0x134   : > { %1153 = vmatprep.mubr.bf16.mxu1 %v1231_v18  ;;  %1205 = vmatpush3.bf16.msra.mxu1 (!%p1001_p5), %v1269_v9  ;;  %v1276_v18 = vld [vmem:[%s1612_s4 + $0x38] sm:$0xff] (!%p1001_p5)  }
 0x135   : > { %1198 = vmatprep.subr.bf16.mxu1 (!%p1001_p5), %v1270_v10 }
 0x136   : > { %1174 = vmatpush3.bf16.msra.mxu0 (!%p1001_p5), %v1273_v15 }
 0x137   : > { %1175 = vmatprep.subr.bf16.mxu0 (!%p1001_p5), %v1274_v16 }
 0x138   : > { %1206 = vmatpush3.bf16.msra.mxu1 (!%p1001_p5), %v1270_v10 }
 0x139   : > { %1199 = vmatprep.subr.bf16.mxu1 (!%p1001_p5), %v1271_v13 }
 0x13a   : > { %1176 = vmatpush3.bf16.msra.mxu0 (!%p1001_p5), %v1274_v16 }
 0x13b   : > { %1154 = vmatmul.mubr.bf16.gmra.mrb[4].mxu1 %v1232_v19  ;;  %1177 = vmatprep.subr.bf16.mxu0 (!%p1001_p5), %v1275_v17 }
 0x13c   : > { %1157 = vmatprep.mubr.bf16.mxu1 %v1233_v20  ;;  %1207 = vmatpush3.bf16.msra.mxu1 (!%p1001_p5), %v1271_v13 }
 0x13d   : > { %1200 = vmatprep.subr.bf16.mxu1 (!%p1001_p5), %v1272_v14 }
 0x13e   : > { %1178 = vmatpush3.bf16.msra.mxu0 (!%p1001_p5), %v1275_v17 }
 0x13f   : > { %1179 = vmatprep.subr.bf16.mxu0 (!%p1001_p5), %v1276_v18 }
 0x140   : > { %1208 = vmatpush3.bf16.msra.mxu1 (!%p1001_p5), %v1272_v14 }
 0x141   : > { %1201 = vmatprep.subr.bf16.mxu1 (!%p1001_p5), %v1273_v15 }
 0x142   : > { %1180 = vmatpush3.bf16.msra.mxu0 (!%p1001_p5), %v1276_v18 }
 0x143   : > { %1158 = vmatmul.mubr.bf16.gmra.mrb[8].mxu1 %v1234_v21 }
 0x144   : > { %1161 = vmatprep.mubr.bf16.mxu1 %v1235_v22  ;;  %1209 = vmatpush3.bf16.msra.mxu1 (!%p1001_p5), %v1273_v15 }
 0x145   : > { %1202 = vmatprep.subr.bf16.mxu1 (!%p1001_p5), %v1274_v16 }
 0x148   : > { %1210 = vmatpush3.bf16.msra.mxu1 (!%p1001_p5), %v1274_v16 }
 0x149   : > { %1203 = vmatprep.subr.bf16.mxu1 (!%p1001_p5), %v1275_v17 }
 0x14b   : > { %1162 = vmatmul.mubr.bf16.gmra.mrb[12].mxu1 %v1236_v23 }
 0x14c   : > { %1211 = vmatpush3.bf16.msra.mxu1 (!%p1001_p5), %v1275_v17 }
 0x14d   : > { %1204 = vmatprep.subr.bf16.mxu1 (!%p1001_p5), %v1276_v18 }
 0x150   : > { %1212 = vmatpush3.bf16.msra.mxu1 (!%p1001_p5), %v1276_v18 }
 0x206   : > { %v1151_v25 = vpop.f32.mrb[0].mxu1 }
 0x207   : > { %v636_v26 = vadd.f32 %v1151_v25, %v992_v24  ;;  %v627_v27 = vpop.f32.mrb[1].mxu1  ;;  %v1002_v25 = vld [vmem:[%s1613_s5] ss:$0 sm:$0xff] (!%p1001_p5) }
 0x208   : > { %v628_v28 = vadd.f32 %v992_v24, %v627_v27  ;;  %v1152_v29 = vpop.f32.mrb[2].mxu1 }
 0x209   : > { %1237 = vtanh.f32 %v636_v26  ;;  %v639_v30 = vadd.f32 %v1152_v29, %v992_v24  ;;  %v630_v31 = vpop.f32.mrb[3].mxu1 }
 0x20a   : > { %1239 = vtanh.f32 %v628_v28  ;;  %v631_v32 = vadd.f32 %v992_v24, %v630_v31 }
 0x20b   : > { %1241 = vtanh.f32 %v639_v30 }
 0x20c   : > { %1243 = vtanh.f32 %v631_v32 }
 0x20e   : > { %v1155_v33 = vpop.f32.mrb[4].mxu1 }
 0x20f   : > { %v652_v34 = vadd.f32 %v1155_v33, %v992_v24  ;;  %v643_v35 = vpop.f32.mrb[5].mxu1 }
 0x210   : > { %v644_v36 = vadd.f32 %v992_v24, %v643_v35  ;;  %v1156_v37 = vpop.f32.mrb[6].mxu1 }
 0x211   : > { %1245 = vtanh.f32 %v652_v34  ;;  %v655_v38 = vadd.f32 %v1156_v37, %v992_v24  ;;  %v646_v39 = vpop.f32.mrb[7].mxu1 }
 0x212   : > { %1247 = vtanh.f32 %v644_v36  ;;  %v647_v40 = vadd.f32 %v992_v24, %v646_v39 }
 0x213   : > { %v1411_v41 = vpop.eup %1237  ;;  %1249 = vtanh.f32 %v655_v38 }
 0x214   : > { %v1413_v42 = vpop.eup %1239  ;;  %708 = vst [vmem:[#allocation2 + $0x10] sm:$0xff] %v1411_v41  ;;  %1251 = vtanh.f32 %v647_v40  ;;  %728 = vst [vmem:[%s1615_s7 + $0x10] sm:$0xff] (!%p1001_p5), %v1411_v41 }
 0x215   : > { %v1416_v43 = vpop.eup %1241  ;;  %706 = vst [vmem:[#allocation2] sm:$0xff] %v1413_v42  ;;  %726 = vst [vmem:[%s1615_s7] sm:$0xff] (!%p1001_p5), %v1413_v42 }
 0x216   : > { %v1419_v44 = vpop.eup %1243  ;;  %709 = vst [vmem:[#allocation2 + $0x18] sm:$0xff] %v1416_v43  ;;  %v1159_v45 = vpop.f32.mrb[8].mxu1  ;;  %729 = vst [vmem:[%s1615_s7 + $0x18] sm:$0xff] (!%p1001_p5), %v1416_v43  ;;  %v743_v19 = vpack.c.bf16 (!%p1001_p5), %v1416_v43, %v1411_v41 }
 0x217   : > { %707 = vst [vmem:[#allocation2 + $0x8] sm:$0xff] %v1419_v44  ;;  %v668_v46 = vadd.f32 %v1159_v45, %v992_v24  ;;  %v659_v47 = vpop.f32.mrb[9].mxu1  ;;  %727 = vst [vmem:[%s1615_s7 + $0x8] sm:$0xff] (!%p1001_p5), %v1419_v44  ;;  %v742_v11 = vpack.c.bf16 (!%p1001_p5), %v1419_v44, %v1413_v42 }
 0x218   : > { %v660_v48 = vadd.f32 %v992_v24, %v659_v47  ;;  %v1160_v49 = vpop.f32.mrb[10].mxu1 }
 0x219   : > { %1253 = vtanh.f32 %v668_v46  ;;  %v671_v50 = vadd.f32 %v1160_v49, %v992_v24  ;;  %v662_v51 = vpop.f32.mrb[11].mxu1  ;;  %1181 = vmatprep.mubr.bf16.mxu0 (!%p1001_p5), %v742_v11 }
 0x21a   : > { %1255 = vtanh.f32 %v660_v48  ;;  %v663_v52 = vadd.f32 %v992_v24, %v662_v51  ;;  %1182 = vmatmul.mubr.bf16.vlgmr.msra.gmra.mrb[0].mxu0 (!%p1001_p5), %v743_v19 }
 0x21b   : > { %v1423_v53 = vpop.eup %1245  ;;  %1257 = vtanh.f32 %v671_v50 }
 0x21c   : > { %v1425_v54 = vpop.eup %1247  ;;  %712 = vst [vmem:[#allocation2 + $0x30] sm:$0xff] %v1423_v53  ;;  %1259 = vtanh.f32 %v663_v52  ;;  %732 = vst [vmem:[%s1615_s7 + $0x30] sm:$0xff] (!%p1001_p5), %v1423_v53 }
 0x21d   : > { %v1428_v55 = vpop.eup %1249  ;;  %710 = vst [vmem:[#allocation2 + $0x20] sm:$0xff] %v1425_v54  ;;  %730 = vst [vmem:[%s1615_s7 + $0x20] sm:$0xff] (!%p1001_p5), %v1425_v54 }
 0x21e   : > { %v1431_v56 = vpop.eup %1251  ;;  %713 = vst [vmem:[#allocation2 + $0x38] sm:$0xff] %v1428_v55  ;;  %v1163_v57 = vpop.f32.mrb[12].mxu1  ;;  %733 = vst [vmem:[%s1615_s7 + $0x38] sm:$0xff] (!%p1001_p5), %v1428_v55  ;;  %v745_v23 = vpack.c.bf16 (!%p1001_p5), %v1428_v55, %v1423_v53 }
 0x21f   : > { %711 = vst [vmem:[#allocation2 + $0x28] sm:$0xff] %v1431_v56  ;;  %v684_v58 = vadd.f32 %v1163_v57, %v992_v24  ;;  %v675_v59 = vpop.f32.mrb[13].mxu1  ;;  %731 = vst [vmem:[%s1615_s7 + $0x28] sm:$0xff] (!%p1001_p5), %v1431_v56  ;;  %v744_v21 = vpack.c.bf16 (!%p1001_p5), %v1431_v56, %v1425_v54 }
 0x220   : > { %v676_v60 = vadd.f32 %v992_v24, %v675_v59  ;;  %v1164_v61 = vpop.f32.mrb[14].mxu1 }
 0x221   : > { %1261 = vtanh.f32 %v684_v58  ;;  %v687_v62 = vadd.f32 %v1164_v61, %v992_v24  ;;  %v678_v63 = vpop.f32.mrb[15].mxu1  ;;  %1185 = vmatprep.mubr.bf16.mxu0 (!%p1001_p5), %v744_v21 }
 0x222   : > { %1263 = vtanh.f32 %v676_v60  ;;  %v679_v0 = vadd.f32 %v992_v24, %v678_v63  ;;  %1186 = vmatmul.mubr.bf16.gmra.mrb[4].mxu0 (!%p1001_p5), %v745_v23 }
 0x223   : > { %v1435_v1 = vpop.eup %1253  ;;  %1265 = vtanh.f32 %v687_v62 }
 0x224   : > { %v1256_v2 = vpop.eup %1255  ;;  %716 = vst [vmem:[#allocation2 + $0x50] sm:$0xff] %v1435_v1  ;;  %1267 = vtanh.f32 %v679_v0  ;;  %736 = vst [vmem:[%s1615_s7 + $0x50] sm:$0xff] (!%p1001_p5), %v1435_v1 }
 0x225   : > { %v1438_v3 = vpop.eup %1257  ;;  %714 = vst [vmem:[#allocation2 + $0x40] sm:$0xff] %v1256_v2  ;;  %734 = vst [vmem:[%s1615_s7 + $0x40] sm:$0xff] (!%p1001_p5), %v1256_v2 }
 0x226   : > { %v1260_v4 = vpop.eup %1259  ;;  %717 = vst [vmem:[#allocation2 + $0x58] sm:$0xff] %v1438_v3  ;;  %737 = vst [vmem:[%s1615_s7 + $0x58] sm:$0xff] (!%p1001_p5), %v1438_v3  ;;  %v747_v20 = vpack.c.bf16 (!%p1001_p5), %v1438_v3, %v1435_v1 }
 0x227   : > { %715 = vst [vmem:[#allocation2 + $0x48] sm:$0xff] %v1260_v4  ;;  %735 = vst [vmem:[%s1615_s7 + $0x48] sm:$0xff] (!%p1001_p5), %v1260_v4  ;;  %v746_v12 = vpack.c.bf16 (!%p1001_p5), %v1260_v4, %v1256_v2 }
 0x229   : > { %725 = sbr.rel (%p1001_p5) target bundleno = 780 (0x30c), region = 52  ;;  %1189 = vmatprep.mubr.bf16.mxu1 (!%p1001_p5), %v746_v12 }
 0x22a   : > { %1190 = vmatmul.mubr.bf16.vlgmr.msra.gmra.mrb[0].mxu1 (!%p1001_p5), %v747_v20 }
 0x22b   : > { %v1441_v5 = vpop.eup %1261 }
 0x22c   : > { %v1443_v6 = vpop.eup %1263  ;;  %720 = vst [vmem:[#allocation2 + $0x70] sm:$0xff] %v1441_v5  ;;  %740 = vst [vmem:[%s1615_s7 + $0x70] sm:$0xff] (!%p1001_p5), %v1441_v5 }
 0x22d   : > { %v1446_v7 = vpop.eup %1265  ;;  %718 = vst [vmem:[#allocation2 + $0x60] sm:$0xff] %v1443_v6  ;;  %738 = vst [vmem:[%s1615_s7 + $0x60] sm:$0xff] (!%p1001_p5), %v1443_v6 }
 0x22e   : > { %v1449_v8 = vpop.eup %1267  ;;  %721 = vst [vmem:[#allocation2 + $0x78] sm:$0xff] %v1446_v7  ;;  %741 = vst [vmem:[%s1615_s7 + $0x78] sm:$0xff] (!%p1001_p5), %v1446_v7  ;;  %v749_v24 = vpack.c.bf16 (!%p1001_p5), %v1446_v7, %v1441_v5 }
 0x22f   : > { %719 = vst [vmem:[#allocation2 + $0x68] sm:$0xff] %v1449_v8  ;;  %739 = vst [vmem:[%s1615_s7 + $0x68] sm:$0xff] (!%p1001_p5), %v1449_v8  ;;  %v748_v22 = vpack.c.bf16 (!%p1001_p5), %v1449_v8, %v1443_v6 }
 0x231   : > { %1193 = vmatprep.mubr.bf16.mxu1 %v748_v22 }
 0x232   : > { %1194 = vmatmul.mubr.bf16.gmra.mrb[4].mxu1 %v749_v24 }
 0x2ed   : > { %v1183_v26 = vpop.f32.mrb[0].mxu0 }
 0x2ee   : > { %v864_v28 = vadd.f32 %v1183_v26, %v1002_v25  ;;  %v855_v30 = vpop.f32.mrb[1].mxu0 }
 0x2ef   : > { %v856_v32 = vadd.f32 %v1002_v25, %v855_v30  ;;  %v1184_v34 = vpop.f32.mrb[2].mxu0 }
 0x2f0   : > { %920 = vst [vmem:[%s1614_s6 + $0x10] sm:$0xff] %v864_v28  ;;  %v867_v36 = vadd.f32 %v1184_v34, %v1002_v25  ;;  %v858_v38 = vpop.f32.mrb[3].mxu0 }
 0x2f1   : > { %918 = vst [vmem:[%s1614_s6] sm:$0xff] %v856_v32  ;;  %v859_v40 = vadd.f32 %v1002_v25, %v858_v38 }
 0x2f2   : > { %921 = vst [vmem:[%s1614_s6 + $0x18] sm:$0xff] %v867_v36 }
 0x2f3   : > { %919 = vst [vmem:[%s1614_s6 + $0x8] sm:$0xff] %v859_v40 }
 0x2f5   : > { %v1187_v42 = vpop.f32.mrb[4].mxu0 }
 0x2f6   : > { %v880_v44 = vadd.f32 %v1187_v42, %v1002_v25  ;;  %v871_v46 = vpop.f32.mrb[5].mxu0 }
 0x2f7   : > { %v872_v48 = vadd.f32 %v1002_v25, %v871_v46  ;;  %v1188_v50 = vpop.f32.mrb[6].mxu0 }
 0x2f8   : > { %924 = vst [vmem:[%s1614_s6 + $0x30] sm:$0xff] %v880_v44  ;;  %v883_v52 = vadd.f32 %v1188_v50, %v1002_v25  ;;  %v874_v54 = vpop.f32.mrb[7].mxu0 }
 0x2f9   : > { %922 = vst [vmem:[%s1614_s6 + $0x20] sm:$0xff] %v872_v48  ;;  %v875_v56 = vadd.f32 %v1002_v25, %v874_v54 }
 0x2fa   : > { %925 = vst [vmem:[%s1614_s6 + $0x38] sm:$0xff] %v883_v52 }
 0x2fb   : > { %923 = vst [vmem:[%s1614_s6 + $0x28] sm:$0xff] %v875_v56 }
 0x2fd   : > { %v1191_v27 = vpop.f32.mrb[0].mxu1 }
 0x2fe   : > { %v896_v29 = vadd.f32 %v1191_v27, %v1002_v25  ;;  %v887_v31 = vpop.f32.mrb[1].mxu1 }
 0x2ff   : > { %v888_v33 = vadd.f32 %v1002_v25, %v887_v31  ;;  %v1192_v35 = vpop.f32.mrb[2].mxu1 }
 0x300   : > { %928 = vst [vmem:[%s1614_s6 + $0x50] sm:$0xff] %v896_v29  ;;  %v899_v37 = vadd.f32 %v1192_v35, %v1002_v25  ;;  %v890_v39 = vpop.f32.mrb[3].mxu1 }
 0x301   : > { %926 = vst [vmem:[%s1614_s6 + $0x40] sm:$0xff] %v888_v33  ;;  %v891_v41 = vadd.f32 %v1002_v25, %v890_v39 }
 0x302   : > { %929 = vst [vmem:[%s1614_s6 + $0x58] sm:$0xff] %v899_v37 }
 0x303   : > { %927 = vst [vmem:[%s1614_s6 + $0x48] sm:$0xff] %v891_v41 }
 0x305   : > { %v1195_v43 = vpop.f32.mrb[4].mxu1 }
 0x306   : > { %v912_v45 = vadd.f32 %v1195_v43, %v1002_v25  ;;  %v903_v47 = vpop.f32.mrb[5].mxu1 }
 0x307   : > { %v904_v49 = vadd.f32 %v1002_v25, %v903_v47  ;;  %v1196_v51 = vpop.f32.mrb[6].mxu1 }
 0x308   : > { %932 = vst [vmem:[%s1614_s6 + $0x70] sm:$0xff] %v912_v45  ;;  %v915_v53 = vadd.f32 %v1196_v51, %v1002_v25  ;;  %v906_v55 = vpop.f32.mrb[7].mxu1 }
 0x309   : > { %930 = vst [vmem:[%s1614_s6 + $0x60] sm:$0xff] %v904_v49  ;;  %v907_v57 = vadd.f32 %v1002_v25, %v906_v55 }
 0x30a   : > { %933 = vst [vmem:[%s1614_s6 + $0x78] sm:$0xff] %v915_v53 }
 0x30b   : > { %931 = vst [vmem:[%s1614_s6 + $0x68] sm:$0xff] %v907_v57 }
 0x30c PF: > { %s18_s24 = sadd.s32 1, %s1283_s24  }
 0x30d   : > { %p15_p6 = scmp.ge.s32.totalorder %s18_s24, 5  }
 0x30f   :  { %17 = sbr.rel (!%p15_p6) target bundleno = 1 (0x1), region = 89 }

</bundles_post_ra>
